<compile_context>
chip_gen: v7x
topology: tpu7x:2x2x1
jax: 0.10.0
libtpu: 0.0.40
codegen_flags: <defaults>
</compile_context>

<pallas_src>
import jax
import jax.numpy as jnp
from jax.experimental import pallas as pl
from jax.experimental.pallas import tpu as pltpu


# ----------------------------- Pallas kernel -----------------------------

def _patch_proj_kernel(x_ref, w_ref, b_ref, o_ref):
    # x_ref: (K, tm)  bf16 K-major patch tile (tm = spatial lane tile)
    # w_ref: (E, K)   bf16 projection weight (constant index map -> resident)
    # b_ref: (E, 1)   f32 bias, broadcast over the spatial lanes
    # o_ref: (E, tm)  output tile, already in NCDHW (channel-major) order
    acc = jnp.dot(w_ref[...], x_ref[...], preferred_element_type=jnp.float32)
    o_ref[...] = (acc + b_ref[...]).astype(o_ref.dtype)


def _device_params():
    """(spatial tile target, vmem_limit_bytes) per TPU generation."""
    try:
        kind = jax.devices()[0].device_kind.lower()
    except Exception:
        kind = ""
    if "v7" in kind:
        # 3.2 TB/s HBM -> amortize the ~0.35us/step overhead; 64 MiB physical
        # VMEM (32 MiB scoped default) -> re-derived budget, explicit limit.
        return 16384, 48 * 1024 * 1024
    if "v6" in kind or "v5p" in kind or "v4" in kind:
        return 8192, 32 * 1024 * 1024
    if "v5" in kind:          # v5e / v5 lite: 0.82 TB/s HBM, 16 MiB scoped default
        return 4096, 32 * 1024 * 1024
    return 2048, None         # unknown chip: stay conservative


def _pick_tm(L, B, target):
    """Lane tile over the flattened spatial axis L (per batch).

    Must be a multiple of 128 (lane-dense output stores) or equal to L.
    Aim for >= 4 total grid steps so both v7x TensorCores get >= 2 steps
    each and BlockSpec double-buffering has something to overlap.
    """
    if L <= 256:
        return L                                    # single full-dim tile (legal)
    want_steps = max(1, -(-4 // max(B, 1)))         # ceil(4 / B) tiles per batch
    tm = min(target, -(-L // want_steps))
    tm = ((tm + 127) // 128) * 128
    return max(128, tm)


def _patch_proj(patches_t, w_mat, b_vec, out_dtype):
    """patches_t: (B, K, L) bf16, w_mat: (E, K) bf16, b_vec: (E,) f32 -> (B, E, L)."""
    B, K, L = patches_t.shape
    E = w_mat.shape[0]
    target, vmem_limit = _device_params()
    tm = _pick_tm(L, B, target)
    grid = (B, pl.cdiv(L, tm))      # partial last L-block: reads are don't-care,
                                    # out-of-bounds writes are masked by Pallas
    bias2d = b_vec.reshape(E, 1).astype(jnp.float32)

    cost = pl.CostEstimate(
        flops=2 * B * L * K * E,
        transcendentals=0,
        bytes_accessed=(B * L * K * patches_t.dtype.itemsize
                        + E * K * w_mat.dtype.itemsize
                        + E * 4
                        + B * E * L * jnp.dtype(out_dtype).itemsize),
    )

    return pl.pallas_call(
        _patch_proj_kernel,
        out_shape=jax.ShapeDtypeStruct((B, E, L), out_dtype),
        grid_spec=pltpu.PrefetchScalarGridSpec(
            num_scalar_prefetch=0,
            grid=grid,
            in_specs=[
                pl.BlockSpec((None, K, tm), lambda b, j: (b, 0, j)),
                pl.BlockSpec((E, K), lambda b, j: (0, 0)),
                pl.BlockSpec((E, 1), lambda b, j: (0, 0)),
            ],
            out_specs=pl.BlockSpec((None, E, tm), lambda b, j: (b, 0, j)),
        ),
        compiler_params=pltpu.CompilerParams(
            dimension_semantics=("parallel", "parallel"),
            vmem_limit_bytes=vmem_limit,
        ),
        cost_estimate=cost,
    )(patches_t, w_mat, bias2d)


# ----------------------------- Module wrapper -----------------------------

class PatchEmbed3D:
    """JAX/Pallas port of the PyTorch PatchEmbed3D (norm_layer=None case).

    Output embeddings are bf16-quantized by default (out_dtype=jnp.bfloat16);
    pass out_dtype=jnp.float32 for an f32 output.
    """

    def __init__(self, patch_size=(2, 4, 4), in_c=3, embed_dim=96, key=None,
                 compute_dtype=jnp.bfloat16, out_dtype=jnp.bfloat16):
        self.patch_size = patch_size
        self.in_chans = in_c
        self.embed_dim = embed_dim
        self.compute_dtype = compute_dtype
        self.out_dtype = out_dtype
        if key is None:
            key = jax.random.PRNGKey(0)
        kw, kb = jax.random.split(key)
        pd, ph, pw = patch_size
        fan_in = in_c * pd * ph * pw
        bound = 1.0 / jnp.sqrt(fan_in)
        # Conv3d weight shape in PyTorch: (embed_dim, in_c, pd, ph, pw).
        self.proj_weight = jax.random.uniform(
            kw, (embed_dim, in_c, pd, ph, pw), jnp.float32, -bound, bound)
        self.proj_bias = jax.random.uniform(
            kb, (embed_dim,), jnp.float32, -bound, bound)

        # (E, K) matmul weight, K flattened over (in, kd, kh, kw) to match the
        # K-major patch layout.  E stays unpadded (it is the sublane dim of the
        # kernel output); K stays unpadded (HBM-bound, MXU underfill is free).
        K = fan_in
        self._w_mat = self.proj_weight.reshape(embed_dim, K).astype(compute_dtype)
        self._b_vec = self.proj_bias.astype(jnp.float32)

    def __call__(self, x):
        # x: (B, C, D, H, W) float32
        B, C, D, H, W = x.shape
        pd, ph, pw = self.patch_size

        # Cast up front so the pad + patch-extraction relayout moves bf16 bytes
        # (cast/pad/transpose fuse into one XLA fusion under jit).
        x = x.astype(self.compute_dtype)

        # Same end-padding semantics as F.pad in the reference forward.
        pad_w = (pw - W % pw) % pw
        pad_h = (ph - H % ph) % ph
        pad_d = (pd - D % pd) % pd
        if pad_w or pad_h or pad_d:
            x = jnp.pad(x, ((0, 0), (0, 0), (0, pad_d), (0, pad_h), (0, pad_w)))
        Dp, Hp, Wp = D + pad_d, H + pad_h, W + pad_w
        Do, Ho, Wo = Dp // pd, Hp // ph, Wp // pw

        # Patch extraction, K-major (single fused XLA relayout):
        # (B,C,Do,pd,Ho,ph,Wo,pw) -> (B,C,pd,ph,pw,Do,Ho,Wo) -> (B, K, L)
        # TODO(synk): fuse this gather into the Pallas kernel to drop one
        # input-sized HBM round trip (see header comment).
        xr = x.reshape(B, C, Do, pd, Ho, ph, Wo, pw)
        xr = jnp.transpose(xr, (0, 1, 3, 5, 7, 2, 4, 6))
        K = C * pd * ph * pw
        L = Do * Ho * Wo
        patches_t = xr.reshape(B, K, L)

        out = _patch_proj(patches_t, self._w_mat, self._b_vec, self.out_dtype)
        # (B, E, L) is already channel-major: the reshape below is free
        # (contiguous), no slice / transpose epilogue remains.
        out = out.reshape(B, self.embed_dim, Do, Ho, Wo)

        # norm_layer is None -> Identity; flatten(2).transpose round trip is a no-op.
        return out, H, W


# ----------------------------- Reference check -----------------------------

def _reference_conv(x, weight, bias, patch_size, compute_dtype=None, out_dtype=None):
    """Pure-JAX reference via lax.conv_general_dilated (NCDHW)."""
    pd, ph, pw = patch_size
    B, C, D, H, W = x.shape
    pad_w = (pw - W % pw) % pw
    pad_h = (ph - H % ph) % ph
    pad_d = (pd - D % pd) % pd
    x = jnp.pad(x, ((0, 0), (0, 0), (0, pad_d), (0, pad_h), (0, pad_w)))
    if compute_dtype is not None:
        x = x.astype(compute_dtype)
        weight = weight.astype(compute_dtype)
    out = jax.lax.conv_general_dilated(
        x, weight, window_strides=patch_size, padding="VALID",
        dimension_numbers=("NCDHW", "OIDHW", "NCDHW"),
        preferred_element_type=jnp.float32)
    out = out + bias.reshape(1, -1, 1, 1, 1)
    if out_dtype is not None:
        out = out.astype(out_dtype)
    return out


if __name__ == "__main__":
    key = jax.random.PRNGKey(0)
    k_in, k_mod = jax.random.split(key)

    # Small shapes; non-divisible D/H/W exercise the F.pad path, and
    # L = 3*13*13 = 507 with a 128-multiple lane tile exercises the masked
    # partial last spatial block.
    B, C, D, H, W = 2, 3, 5, 50, 50
    x = jax.random.normal(k_in, (B, C, D, H, W), jnp.float32)

    module = PatchEmbed3D(patch_size=(2, 4, 4), in_c=C, embed_dim=96, key=k_mod)

    out, h, w = jax.jit(module.__call__)(x)
    out = jax.block_until_ready(out)
    assert (int(h), int(w)) == (H, W)
    assert out.dtype == jnp.dtype(module.out_dtype)

    # Matched-precision reference: bf16 inputs/weights, f32 accumulation,
    # f32 bias add, bf16 output -> isolates kernel correctness from the
    # intentional bf16 quantization.  Only summation order differs.
    ref_matched = _reference_conv(x, module.proj_weight, module.proj_bias,
                                  module.patch_size,
                                  compute_dtype=jnp.bfloat16,
                                  out_dtype=jnp.bfloat16)
    assert out.shape == ref_matched.shape, (out.shape, ref_matched.shape)
    err = float(jnp.max(jnp.abs(out.astype(jnp.float32)
                                - ref_matched.astype(jnp.float32))))
    assert err < 2e-2, f"bf16-matched reference max abs err {err}"

    # Full-f32 reference: difference is only the bf16 quantization of
    # inputs/weights/outputs.
    ref_f32 = _reference_conv(x, module.proj_weight, module.proj_bias,
                              module.patch_size)
    err32 = float(jnp.max(jnp.abs(out.astype(jnp.float32) - ref_f32)))
    assert err32 < 5e-2, f"f32 reference max abs err {err32}"

    print("KERNEL_OK")
</pallas_src>

<mosaic_0001>
module attributes {stable_mosaic.version = 11 : i64} {
  func.func @_patch_proj_kernel(%arg0: i32, %arg1: i32, %arg2: memref<1x96x256xbf16, #tpu.memory_space<vmem>>, %arg3: memref<96x96xbf16, #tpu.memory_space<vmem>>, %arg4: memref<96x1xf32, #tpu.memory_space<vmem>>, %arg5: memref<1x96x256xbf16, #tpu.memory_space<vmem>>) attributes {dimension_semantics = [#tpu.dimension_semantics<parallel>, #tpu.dimension_semantics<parallel>], iteration_bounds = array<i64: 2, 2>, scalar_prefetch = 0 : i64, scratch_operands = 0 : i64, tpu.core_type = #tpu.core_type<tc>, window_params = [{transform_indices = @transform_0, window_bounds = array<i64: 1, 96, 256>}, {pipeline_mode = #tpu.pipeline_mode<synchronous>, transform_indices = @transform_1, window_bounds = array<i64: 96, 96>}, {pipeline_mode = #tpu.pipeline_mode<synchronous>, transform_indices = @transform_2, window_bounds = array<i64: 96, 1>}, {transform_indices = @transform_3, window_bounds = array<i64: 1, 96, 256>}]} {
    %c0 = arith.constant 0 : index
    %c0_0 = arith.constant 0 : index
    %0 = vector.load %arg3[%c0, %c0_0] : memref<96x96xbf16, #tpu.memory_space<vmem>>, vector<96x96xbf16>
    %c0_1 = arith.constant 0 : index
    %c0_2 = arith.constant 0 : index
    %c0_3 = arith.constant 0 : index
    %1 = vector.load %arg2[%c0_1, %c0_2, %c0_3] : memref<1x96x256xbf16, #tpu.memory_space<vmem>>, vector<1x96x256xbf16>
    %2 = vector.shape_cast %1 : vector<1x96x256xbf16> to vector<96x256xbf16>
    %cst = arith.constant dense<0.000000e+00> : vector<96x256xf32>
    %3 = tpu.matmul %0, %2, %cst {dimension_numbers = #tpu.dot_dimension_numbers<[1], [0], [0], [1], [0, 0, 1, 1], [], []>} : vector<96x96xbf16>, vector<96x256xbf16>, vector<96x256xf32> -> vector<96x256xf32>
    %c0_4 = arith.constant 0 : index
    %c0_5 = arith.constant 0 : index
    %4 = vector.load %arg4[%c0_4, %c0_5] : memref<96x1xf32, #tpu.memory_space<vmem>>, vector<96x1xf32>
    %5 = vector.broadcast %4 : vector<96x1xf32> to vector<96x256xf32>
    %6 = arith.addf %3, %5 : vector<96x256xf32>
    %7 = arith.truncf %6 : vector<96x256xf32> to vector<96x256xbf16>
    %c0_6 = arith.constant 0 : index
    %c0_7 = arith.constant 0 : index
    %c0_8 = arith.constant 0 : index
    %8 = vector.load %arg5[%c0_6, %c0_7, %c0_8] : memref<1x96x256xbf16, #tpu.memory_space<vmem>>, vector<1x96x256xbf16>
    %9 = vector.shape_cast %8 : vector<1x96x256xbf16> to vector<96x256xbf16>
    %10 = vector.shape_cast %7 : vector<96x256xbf16> to vector<1x96x256xbf16>
    tpu.vector_store %arg5[%c0_6, %c0_7, %c0_8], %10 {strides = array<i32>} : memref<1x96x256xbf16, #tpu.memory_space<vmem>>, vector<1x96x256xbf16>,
    return
  }
  func.func @transform_0(%arg0: i32, %arg1: i32) -> (i32, i32, i32) {
    %c0_i32 = arith.constant 0 : i32
    %c0_i32_0 = arith.constant 0 : i32
    return %arg0, %c0_i32, %arg1 : i32, i32, i32
  }
  func.func @transform_1(%arg0: i32, %arg1: i32) -> (i32, i32) {
    %c0_i32 = arith.constant 0 : i32
    %c0_i32_0 = arith.constant 0 : i32
    %c0_i32_1 = arith.constant 0 : i32
    return %c0_i32, %c0_i32_0 : i32, i32
  }
  func.func @transform_2(%arg0: i32, %arg1: i32) -> (i32, i32) {
    %c0_i32 = arith.constant 0 : i32
    %c0_i32_0 = arith.constant 0 : i32
    %c0_i32_1 = arith.constant 0 : i32
    return %c0_i32, %c0_i32_0 : i32, i32
  }
  func.func @transform_3(%arg0: i32, %arg1: i32) -> (i32, i32, i32) {
    %c0_i32 = arith.constant 0 : i32
    %c0_i32_0 = arith.constant 0 : i32
    return %arg0, %c0_i32, %arg1 : i32, i32, i32
  }
}

</mosaic_0001>

<bundles_post_ra>
// kernel: a_call__.1
= control target key start
LH: loop header
LB: loop body
LE: loop exit
PB: predicated region body
PF: predicated region fallthrough
CT: control target
= control target key end

     0   :  { %s1044_s12 = smov 0   ;;  %s1046_s13 = smov 0   ;;  %s1256_s0 = inlined_call_operand.vmem [shape: bf16[2,96,507], index: 0, kind: input, shape index: {}]   ;;  %s1257_s1 = inlined_call_operand.vmem [shape: bf16[96,96], index: 1, kind: input, shape index: {}]   ;;  %s1258_s2 = inlined_call_operand.vmem [shape: f32[96,1], index: 2, kind: input, shape index: {}]   ;;  %s1259_s3 = inlined_call_operand.vmem [shape: bf16[2,96,507], index: 3, kind: output, shape index: {}]  }
   0x1   :  { %s1048_s14 = smov 0   ;;  %s1050_s15 = smov 0  }
   0x2   :  { %s1052_s16 = smov 0   ;;  %s1054_s17 = smov 0  }
   0x3   :  { %s1056_s18 = smov 0  }
   0x4 LB: > { %s22_s19 = sadd.s32 1, %s1013_s16  ;;  %s25_s20 = sadd.s32 1, %s1017_s17  ;;  %s1021_s18 = sphi %s1056_s18, %s13_s18   ;;  %s1017_s17 = sphi %s1054_s17, %s1266_s17   ;;  %s1013_s16 = sphi %s1052_s16, %s1265_s16   ;;  %s1009_s15 = sphi %s1050_s15, %s1264_s15   ;;  %s1005_s14 = sphi %s1048_s14, %s1263_s14   ;;  %s1001_s13 = sphi %s1046_s13, %s1262_s13   ;;  %s997_s12 = sphi %s1044_s12, %s1261_s12  }
   0x5   : > { %p23_p0 = scmp.ge.s32.totalorder %s22_s19, 2  ;;  %s809_s21 = sadd.s32 4294967295, %s1021_s18  }
   0x6   : > { %p41_p1 = scmp.ne.s32.totalorder %s1001_s13, %s997_s12  ;;  %p42_p2 = scmp.eq.s32.totalorder %s1021_s18, 0 }
   0x7   : > { %s1268_s19 = smov (%p23_p0, %s22_s19), 0  ;;  %s1270_s20 = smov (!%p23_p0, %s25_s20), %s1017_s17 }
   0x8   : > { %p27_p3 = scmp.ge.s32.totalorder %s1270_s20, 2  ;;  %p115_p4 = scmp.eq.s32.totalorder %s809_s21, 3 }
   0x9   : > { %s30_s22 = ssub.s32 %s1013_s16, %s1268_s19  ;;  %p43_p5 = por %p42_p2, %p41_p1 }
   0xa   : > { %s1272_s20 = smov (%p27_p3, %s1270_s20), 0  ;;  %p1092_p6 = por %p115_p4, %p41_p1 }
   0xb   : > { %s29_s24 = ssub.s32 %s1017_s17, %s1272_s20  ;;  %s34_s26 = sadd.s32 1, %s1001_s13 }
   0xc   : > { %s31_s25 = sor.u32 %s30_s22, %s29_s24  ;;  %p812_p8 = scmp.ge.s32.totalorder %s1021_s18, 4 }
   0xd   : > { %p32_p7 = scmp.eq.s32.totalorder %s31_s25, 0 }
   0xe   : > { %143 = sbr.rel (%p812_p8) target bundleno = 35 (0x23), region = 24 }
   0xf   : > { %s1100_s27 = scalar_select %p32_p7, %s1001_s13, %s34_s26  }
  0x15   : > { %146 = sbr.rel (!%p43_p5) target bundleno = 35 (0x23), region = 28  ;;  %s148_s28 = sand.u32 (%p43_p5), 1, %s1001_s13  }
  0x16   : > { %s880_s29 = smul.u32 (%p43_p5), 96, %s148_s28  ;;  %s813_s30 = sshll.u32 (%p43_p5), %s1013_s16, 1 }
  0x17   : > { %s881_s4 = smul.u32 (%p43_p5), 48, %s1017_s17 }
  0x18   : > { %s150_s10 = scalar_lea.vmem (%p43_p5), [#allocation2], %s880_s29 }
  0x19   : > { %s153_s5 = sadd.s32 (%p43_p5), %s881_s4, %s813_s30 }
  0x1a   : > { %s814_s6 = sshll.u32 (%p43_p5), %s153_s5, 2 }
  0x1b   : > { %s155_s9 = scalar_lea.vmem (%p43_p5), %s1256_s0, %s814_s6 }
  0x1c   : > { %v205_v0 = vld [vmem:[%s155_s9] sm:$0xff]  ;;  %v207_v1 = vld [vmem:[%s155_s9 + $0x10] sm:$0xff] }
  0x1d   : > { %v209_v2 = vld [vmem:[%s155_s9 + $0x20] sm:$0xff]  ;;  %206 = vst [vmem:[%s150_s10] sm:$0xff] %v205_v0  ;;  %208 = vst [vmem:[%s150_s10 + $0x8] sm:$0xff] %v207_v1  ;;  %v211_v3 = vld [vmem:[%s155_s9 + $0x30] sm:$0xff] }
  0x1e   : > { %210 = vst [vmem:[%s150_s10 + $0x10] sm:$0xff] %v209_v2  ;;  %v213_v4 = vld [vmem:[%s155_s9 + $0x40] sm:$0xff]  ;;  %v215_v5 = vld [vmem:[%s155_s9 + $0x50] sm:$0xff]  ;;  %212 = vst [vmem:[%s150_s10 + $0x18] sm:$0xff] %v211_v3 }
  0x1f   : > { %214 = vst [vmem:[%s150_s10 + $0x20] sm:$0xff] %v213_v4  ;;  %216 = vst [vmem:[%s150_s10 + $0x28] sm:$0xff] %v215_v5  ;;  %v217_v6 = vld [vmem:[%s155_s9 + $0x60] sm:$0xff]  ;;  %v219_v7 = vld [vmem:[%s155_s9 + $0x70] sm:$0xff] }
  0x20   : > { %v221_v8 = vld [vmem:[%s155_s9 + $0x80] sm:$0xff]  ;;  %218 = vst [vmem:[%s150_s10 + $0x30] sm:$0xff] %v217_v6  ;;  %220 = vst [vmem:[%s150_s10 + $0x38] sm:$0xff] %v219_v7  ;;  %v223_v9 = vld [vmem:[%s155_s9 + $0x90] sm:$0xff] }
  0x21   : > { %222 = vst [vmem:[%s150_s10 + $0x40] sm:$0xff] %v221_v8  ;;  %v225_v10 = vld [vmem:[%s155_s9 + $0xa0] sm:$0xff]  ;;  %v227_v11 = vld [vmem:[%s155_s9 + $0xb0] sm:$0xff]  ;;  %224 = vst [vmem:[%s150_s10 + $0x48] sm:$0xff] %v223_v9 }
  0x22   : > { %226 = vst [vmem:[%s150_s10 + $0x50] sm:$0xff] %v225_v10  ;;  %228 = vst [vmem:[%s150_s10 + $0x58] sm:$0xff] %v227_v11 }
  0x23 PF: > { %p815_p9 = scmp.ge.s32.totalorder %s1021_s18, 1  ;;  %p233_p10 = scmp.lt.s32.totalorder %s1021_s18, 5 }
  0x25   : > { %p234_p11 = pnand %p815_p9, %p233_p10 }
  0x26   : > { %s240_s11 = sand.u32 (!%p234_p11), 1, %s997_s12   ;;  %v1023_v12 = vmov (!%p234_p11), 0   ;;  %v291_v20 = vld [vmem:[%s1258_s2 + $0x10] sm:$0xff] (!%p234_p11)  ;;  %v289_v21 = vld [vmem:[%s1258_s2] sm:$0xff] (!%p234_p11)  ;;  %v292_v24 = vld [vmem:[%s1258_s2 + $0x18] sm:$0xff] (!%p234_p11)  ;;  %vm451_vm0 = vcmask (!%p234_p11), 785408  }
  0x27   : > { %237 = sbr.rel (%p234_p11) target bundleno = 312 (0x138), region = 66  ;;  %502 = vmatprep.mubr.bf16.mxu0 (!%p234_p11), %v1023_v12  ;;  %532 = vmatprep.mubr.bf16.mxu1 (!%p234_p11), %v1023_v12  ;;  %v290_v25 = vld [vmem:[%s1258_s2 + $0x8] sm:$0xff] (!%p234_p11)  ;;  %v293_v29 = vld [vmem:[%s1258_s2 + $0x20] sm:$0xff] (!%p234_p11)  ;;  %v962_v32 = vld [vmem:[%s1257_s1 + $0x18] sm:$0xff] (!%p234_p11)  }
  0x28   : > { %s1112_s21 = smul.u32 (!%p234_p11), 96, %s240_s11  ;;  %942 = vset.pattern.permute.xlu1 (!%p234_p11), %v1023_v12  ;;  %941 = vset.pattern.permute.xlu0 (!%p234_p11), %v1023_v12  ;;  %v294_v28 = vld [vmem:[%s1258_s2 + $0x28] sm:$0xff] (!%p234_p11)  ;;  %v961_v31 = vld [vmem:[%s1257_s1] sm:$0xff] (!%p234_p11)   ;;  %v296_v33 = vld [vmem:[%s1258_s2 + $0x38] sm:$0xff] (!%p234_p11) }
  0x29   : > { %313 = vperm.xlu1 (!%p234_p11), %942, %v291_v20   ;;  %303 = vperm.xlu0 (!%p234_p11), %941, %v289_v21   ;;  %v295_v34 = vld [vmem:[%s1258_s2 + $0x30] sm:$0xff] (!%p234_p11)  ;;  %v298_v35 = vld [vmem:[%s1258_s2 + $0x48] sm:$0xff] (!%p234_p11)  ;;  %v297_v36 = vld [vmem:[%s1258_s2 + $0x40] sm:$0xff] (!%p234_p11) }
  0x2a   : > { %s1119_s22 = scalar_lea.vmem (!%p234_p11), [#allocation2], %s1112_s21  ;;  %v963_v37 = vld [vmem:[%s1257_s1 + $0x8] sm:$0xff] (!%p234_p11)   ;;  %v964_v38 = vld [vmem:[%s1257_s1 + $0x20] sm:$0xff] (!%p234_p11)   ;;  %v300_v39 = vld [vmem:[%s1258_s2 + $0x58] sm:$0xff] (!%p234_p11) }
  0x2b   : > { %v943_v13 = vld [vmem:[%s1119_s22 + $0x4] ss:$8 sps:$4 sm:$0xff] (!%p234_p11)   ;;  %v945_v14 = vld [vmem:[%s1119_s22] ss:$8 sps:$4 sm:$0xff] (!%p234_p11)   ;;  %v946_v15 = vld [vmem:[%s1119_s22 + $0x14] ss:$8 sps:$4 sm:$0xff] (!%p234_p11)  }
  0x2c   : > { %470 = vmatprep.subr.bf16.mxu0 (!%p234_p11), %v943_v13  ;;  %868 = vmatprep.subr.bf16.mxu1 (!%p234_p11), %v943_v13  ;;  %v948_v16 = vld [vmem:[%s1119_s22 + $0x10] ss:$8 sps:$4 sm:$0xff] (!%p234_p11)   ;;  %v949_v17 = vld [vmem:[%s1119_s22 + $0x24] ss:$8 sps:$4 sm:$0xff] (!%p234_p11)   ;;  %v951_v18 = vld [vmem:[%s1119_s22 + $0x20] ss:$8 sps:$4 sm:$0xff] (!%p234_p11)  }
  0x2d   : > { %471 = vmatpush1.bf16.msra.mxu0 (!%p234_p11), %v945_v14  ;;  %874 = vmatpush1.bf16.msra.mxu1 (!%p234_p11), %v945_v14  ;;  %v952_v19 = vld [vmem:[%s1119_s22 + $0x34] ss:$8 sps:$4 sm:$0xff] (!%p234_p11)   ;;  %v954_v22 = vld [vmem:[%s1119_s22 + $0x30] ss:$8 sps:$4 sm:$0xff] (!%p234_p11)   ;;  %v955_v23 = vld [vmem:[%s1119_s22 + $0x44] ss:$8 sps:$4 sm:$0xff] (!%p234_p11)  }
  0x2e   : > { %472 = vmatprep.subr.bf16.mxu0 %v946_v15  ;;  %869 = vmatprep.subr.bf16.mxu1 %v946_v15  ;;  %v957_v26 = vld [vmem:[%s1119_s22 + $0x40] ss:$8 sps:$4 sm:$0xff]   ;;  %v958_v27 = vld [vmem:[%s1119_s22 + $0x54] ss:$8 sps:$4 sm:$0xff]   ;;  %v960_v30 = vld [vmem:[%s1119_s22 + $0x50] ss:$8 sps:$4 sm:$0xff]  }
  0x2f   : > { %318 = vperm.xlu1 %942, %v292_v24   ;;  %308 = vperm.xlu0 %941, %v290_v25   ;;  %v299_v40 = vld [vmem:[%s1258_s2 + $0x50] sm:$0xff]  ;;  %v966_v42 = vld [vmem:[%s1257_s1 + $0x28] sm:$0xff]   ;;  %s1200_s22 = scalar_lea.vmem [#allocation3], %s1112_s21  ;;  %s852_s21 = sshll.u32 (%p1092_p6), %s1005_s14, 1 }
  0x30   : > { %v965_v41 = vld [vmem:[%s1257_s1 + $0x10] sm:$0xff]   ;;  %s883_s29 = smul.u32 (%p1092_p6), 48, %s1009_s15 }
  0x31   : > { %473 = vmatpush1.bf16.msra.mxu0 %v948_v16  ;;  %875 = vmatpush1.bf16.msra.mxu1 %v948_v16 }
  0x32   : > { %474 = vmatprep.subr.bf16.mxu0 %v949_v17  ;;  %870 = vmatprep.subr.bf16.mxu1 %v949_v17  ;;  %s656_s23 = sadd.s32 (%p1092_p6), %s883_s29, %s852_s21 }
  0x33   : > { %328 = vperm.xlu1 %942, %v294_v28   ;;  %323 = vperm.xlu0 %941, %v293_v29   ;;  %s853_s30 = sshll.u32 (%p1092_p6), %s656_s23, 2 }
  0x34   : > { %s658_s6 = scalar_lea.vmem (%p1092_p6), %s1259_s3, %s853_s30 }
  0x35   : > { %475 = vmatpush1.bf16.msra.mxu0 %v951_v18  ;;  %876 = vmatpush1.bf16.msra.mxu1 %v951_v18 }
  0x36   : > { %476 = vmatprep.subr.bf16.mxu0 %v952_v19  ;;  %871 = vmatprep.subr.bf16.mxu1 %v952_v19 }
  0x37   : > { %338 = vperm.xlu1 %942, %v296_v33   ;;  %333 = vperm.xlu0 %941, %v295_v34  }
  0x39   : > { %477 = vmatpush1.bf16.msra.mxu0 %v954_v22  ;;  %877 = vmatpush1.bf16.msra.mxu1 %v954_v22 }
  0x3a   : > { %478 = vmatprep.subr.bf16.mxu0 %v955_v23  ;;  %872 = vmatprep.subr.bf16.mxu1 %v955_v23 }
  0x3b   : > { %348 = vperm.xlu1 %942, %v298_v35   ;;  %343 = vperm.xlu0 %941, %v297_v36  }
  0x3d   : > { %479 = vmatpush1.bf16.msra.mxu0 %v957_v26  ;;  %878 = vmatpush1.bf16.msra.mxu1 %v957_v26 }
  0x3e   : > { %480 = vmatprep.subr.bf16.mxu0 %v958_v27  ;;  %873 = vmatprep.subr.bf16.mxu1 %v958_v27 }
  0x3f   : > { %358 = vperm.xlu1 %942, %v300_v39   ;;  %353 = vperm.xlu0 %941, %v299_v40  }
  0x41   : > { %481 = vmatpush1.bf16.msra.mxu0 %v960_v30  ;;  %879 = vmatpush1.bf16.msra.mxu1 %v960_v30 }
  0x44   : > { %834 = vmatmul.mubr.msk.bf16.vlgmr.msra.gmra.mrb[0].mxu0 %vm451_vm0, %v961_v31  ;;  %837 = vmatmul.mubr.msk.bf16.vlgmr.msra.gmra.mrb[0].mxu1 %vm451_vm0, %v962_v32 }
  0x45   : > { %512 = vmatprep.mubr.bf16.mxu0 %v1023_v12  ;;  %542 = vmatprep.mubr.bf16.mxu1 %v1023_v12 }
  0x4c   : > { %835 = vmatmul.mubr.msk.bf16.gmra.mrb[4].mxu0 %vm451_vm0, %v963_v37  ;;  %838 = vmatmul.mubr.msk.bf16.gmra.mrb[4].mxu1 %vm451_vm0, %v964_v38 }
  0x4d   : > { %522 = vmatprep.mubr.bf16.mxu0 %v1023_v12  ;;  %552 = vmatprep.mubr.bf16.mxu1 %v1023_v12 }
  0x54   : > { %836 = vmatmul.mubr.msk.bf16.gmra.mrb[8].mxu0 %vm451_vm0, %v965_v41  ;;  %839 = vmatmul.mubr.msk.bf16.gmra.mrb[8].mxu1 %vm451_vm0, %v966_v42 }
  0xa8   : > { %v314_v43 = vpop.permute.xlu1 %313  ;;  %v304_v44 = vpop.permute.xlu0 %303 }
  0xae   : > { %v319_v45 = vpop.permute.xlu1 %318  ;;  %v309_v46 = vpop.permute.xlu0 %308 }
  0xb2   : > { %v1197_v47 = vpop.permute.xlu1 %328  ;;  %v324_v48 = vpop.permute.xlu0 %323 }
  0xb6   : > { %v339_v49 = vpop.permute.xlu1 %338  ;;  %v334_v50 = vpop.permute.xlu0 %333 }
  0xba   : > { %v349_v7 = vpop.permute.xlu1 %348  ;;  %v344_v8 = vpop.permute.xlu0 %343 }
  0xbe   : > { %v359_v29 = vpop.permute.xlu1 %358  ;;  %v354_v30 = vpop.permute.xlu0 %353 }
 0x117   : > { %v504_v51 = vpop.f32.mrb[0].mxu0  ;;  %v534_v52 = vpop.f32.mrb[0].mxu1 }
 0x118   : > { %v505_v53 = vadd.f32 %v504_v51, %v304_v44  ;;  %v535_v54 = vadd.f32 %v534_v52, %v334_v50  ;;  %v506_v55 = vpop.f32.mrb[1].mxu0  ;;  %v536_v56 = vpop.f32.mrb[1].mxu1 }
 0x119   : > { %v507_v57 = vadd.f32 %v506_v55, %v304_v44  ;;  %v537_v58 = vadd.f32 %v536_v56, %v334_v50  ;;  %v508_v59 = vpop.f32.mrb[2].mxu0  ;;  %v538_v60 = vpop.f32.mrb[2].mxu1 }
 0x11a   : > { %v509_v61 = vadd.f32 %v508_v59, %v309_v46  ;;  %v539_v62 = vadd.f32 %v538_v60, %v339_v49  ;;  %v510_v63 = vpop.f32.mrb[3].mxu0  ;;  %v540_v0 = vpop.f32.mrb[3].mxu1 }
 0x11b   : > { %v856_v1 = vpack.c.bf16 %v507_v57, %v505_v53  ;;  %v862_v2 = vpack.c.bf16 %v537_v58, %v535_v54  ;;  %v511_v3 = vadd.f32 %v510_v63, %v309_v46  ;;  %v541_v4 = vadd.f32 %v540_v0, %v339_v49 }
 0x11d   : > { %635 = vst [vmem:[%s1200_s22] sm:$0xff] %v856_v1  ;;  %641 = vst [vmem:[%s1200_s22 + $0x30] sm:$0xff] %v862_v2  ;;  %v857_v5 = vpack.c.bf16 %v511_v3, %v509_v61  ;;  %v863_v6 = vpack.c.bf16 %v541_v4, %v539_v62 }
 0x11f   : > { %636 = vst [vmem:[%s1200_s22 + $0x8] sm:$0xff] %v857_v5  ;;  %642 = vst [vmem:[%s1200_s22 + $0x38] sm:$0xff] %v863_v6  ;;  %v514_v9 = vpop.f32.mrb[4].mxu0  ;;  %v544_v10 = vpop.f32.mrb[4].mxu1 }
 0x120   : > { %v515_v11 = vadd.f32 %v514_v9, %v314_v43  ;;  %v545_v12 = vadd.f32 %v544_v10, %v344_v8  ;;  %v516_v13 = vpop.f32.mrb[5].mxu0  ;;  %v546_v14 = vpop.f32.mrb[5].mxu1 }
 0x121   : > { %v517_v15 = vadd.f32 %v516_v13, %v314_v43  ;;  %v547_v16 = vadd.f32 %v546_v14, %v344_v8  ;;  %v518_v17 = vpop.f32.mrb[6].mxu0  ;;  %v548_v18 = vpop.f32.mrb[6].mxu1 }
 0x122   : > { %v519_v19 = vadd.f32 %v518_v17, %v319_v45  ;;  %v549_v20 = vadd.f32 %v548_v18, %v349_v7  ;;  %v520_v21 = vpop.f32.mrb[7].mxu0  ;;  %v550_v22 = vpop.f32.mrb[7].mxu1 }
 0x123   : > { %v858_v23 = vpack.c.bf16 %v517_v15, %v515_v11  ;;  %v864_v24 = vpack.c.bf16 %v547_v16, %v545_v12  ;;  %v521_v25 = vadd.f32 %v520_v21, %v319_v45  ;;  %v551_v26 = vadd.f32 %v550_v22, %v349_v7 }
 0x124   : > { %v720_v57 = vld [vmem:[%s1200_s22 + $0x30] sm:$0xff] (%p1092_p6) }
 0x125   : > { %637 = vst [vmem:[%s1200_s22 + $0x10] sm:$0xff] %v858_v23  ;;  %643 = vst [vmem:[%s1200_s22 + $0x40] sm:$0xff] %v864_v24  ;;  %v859_v27 = vpack.c.bf16 %v521_v25, %v519_v19  ;;  %v865_v28 = vpack.c.bf16 %v551_v26, %v549_v20 }
 0x126   : > { %v722_v58 = vld [vmem:[%s1200_s22 + $0x38] sm:$0xff] (%p1092_p6)  ;;  %721 = vst [vmem:[%s658_s6 + $0x60] sm:$0xff] (%p1092_p6), %v720_v57 }
 0x127   : > { %638 = vst [vmem:[%s1200_s22 + $0x18] sm:$0xff] %v859_v27  ;;  %644 = vst [vmem:[%s1200_s22 + $0x48] sm:$0xff] %v865_v28  ;;  %v524_v31 = vpop.f32.mrb[8].mxu0  ;;  %v554_v32 = vpop.f32.mrb[8].mxu1 }
 0x128   : > { %v525_v33 = vadd.f32 %v524_v31, %v324_v48  ;;  %v555_v34 = vadd.f32 %v554_v32, %v354_v30  ;;  %v526_v35 = vpop.f32.mrb[9].mxu0  ;;  %v556_v36 = vpop.f32.mrb[9].mxu1  ;;  %723 = vst [vmem:[%s658_s6 + $0x70] sm:$0xff] (%p1092_p6), %v722_v58 }
 0x129   : > { %v527_v37 = vadd.f32 %v526_v35, %v324_v48  ;;  %v557_v38 = vadd.f32 %v556_v36, %v354_v30  ;;  %v528_v39 = vpop.f32.mrb[10].mxu0  ;;  %v558_v40 = vpop.f32.mrb[10].mxu1  ;;  %653 = sbr.rel (!%p1092_p6) target bundleno = 312 (0x138), region = 74  ;;  %v710_v48 = vld [vmem:[%s1200_s22 + $0x8] sm:$0xff] (%p1092_p6) }
 0x12a   : > { %v529_v41 = vadd.f32 %v528_v39, %v1197_v47  ;;  %v559_v42 = vadd.f32 %v558_v40, %v359_v29  ;;  %v530_v43 = vpop.f32.mrb[11].mxu0  ;;  %v560_v44 = vpop.f32.mrb[11].mxu1  ;;  %711 = vst [vmem:[%s658_s6 + $0x10] sm:$0xff] (%p1092_p6), %v710_v48 }
 0x12b   : > { %v860_v45 = vpack.c.bf16 %v527_v37, %v525_v33  ;;  %v866_v46 = vpack.c.bf16 %v557_v38, %v555_v34  ;;  %v531_v49 = vadd.f32 %v530_v43, %v1197_v47  ;;  %v561_v50 = vadd.f32 %v560_v44, %v359_v29  ;;  %v708_v47 = vld [vmem:[%s1200_s22] sm:$0xff] (%p1092_p6) }
 0x12c   : > { %v712_v53 = vld [vmem:[%s1200_s22 + $0x10] sm:$0xff] (%p1092_p6)  ;;  %v724_v59 = vld [vmem:[%s1200_s22 + $0x40] sm:$0xff] (%p1092_p6)  ;;  %709 = vst [vmem:[%s658_s6] sm:$0xff] (%p1092_p6), %v708_v47 }
 0x12d   : > { %639 = vst [vmem:[%s1200_s22 + $0x20] sm:$0xff] %v860_v45  ;;  %645 = vst [vmem:[%s1200_s22 + $0x50] sm:$0xff] %v866_v46  ;;  %v861_v51 = vpack.c.bf16 %v531_v49, %v529_v41  ;;  %v867_v52 = vpack.c.bf16 %v561_v50, %v559_v42 }
 0x12e   : > { %v714_v54 = vld [vmem:[%s1200_s22 + $0x18] sm:$0xff] (%p1092_p6)  ;;  %v726_v60 = vld [vmem:[%s1200_s22 + $0x48] sm:$0xff] (%p1092_p6)  ;;  %713 = vst [vmem:[%s658_s6 + $0x20] sm:$0xff] (%p1092_p6), %v712_v53  ;;  %725 = vst [vmem:[%s658_s6 + $0x80] sm:$0xff] (%p1092_p6), %v724_v59 }
 0x12f   : > { %640 = vst [vmem:[%s1200_s22 + $0x28] sm:$0xff] %v861_v51  ;;  %646 = vst [vmem:[%s1200_s22 + $0x58] sm:$0xff] %v867_v52 }
 0x130   : > { %715 = vst [vmem:[%s658_s6 + $0x30] sm:$0xff] %v714_v54  ;;  %727 = vst [vmem:[%s658_s6 + $0x90] sm:$0xff] %v726_v60 }
 0x134   : > { %v716_v55 = vld [vmem:[%s1200_s22 + $0x20] sm:$0xff]  ;;  %v728_v61 = vld [vmem:[%s1200_s22 + $0x50] sm:$0xff] }
 0x135   : > { %717 = vst [vmem:[%s658_s6 + $0x40] sm:$0xff] %v716_v55  ;;  %729 = vst [vmem:[%s658_s6 + $0xa0] sm:$0xff] %v728_v61 }
 0x136   : > { %v718_v56 = vld [vmem:[%s1200_s22 + $0x28] sm:$0xff]  ;;  %v730_v62 = vld [vmem:[%s1200_s22 + $0x58] sm:$0xff] }
 0x137   : > { %719 = vst [vmem:[%s658_s6 + $0x50] sm:$0xff] %v718_v56  ;;  %731 = vst [vmem:[%s658_s6 + $0xb0] sm:$0xff] %v730_v62 }
 0x138 PF: > { %s13_s18 = sadd.s32 1, %s1021_s18   ;;  %s1261_s12 = smov %s1001_s13 }
 0x139   : > { %p10_p12 = scmp.ge.s32.totalorder %s13_s18, 6   ;;  %s1262_s13 = smov %s1100_s27 }
 0x13a   : > { %s1263_s14 = smov %s1013_s16  ;;  %s1264_s15 = smov %s1017_s17 }
 0x13b   : > { %s1265_s16 = smov %s1268_s19  ;;  %s1266_s17 = smov %s1272_s20 }
 0x13c   :  { %12 = sbr.rel (!%p10_p12) target bundleno = 4 (0x4), region = 143 }

</bundles_post_ra>
